<compile_context>
chip_gen: v6e
topology: v6e:2x2x1
jax: 0.10.0
libtpu: 0.0.40
codegen_flags: <defaults>
</compile_context>

<pallas_src>
import jax
import jax.numpy as jnp
from jax.experimental import pallas as pl
from jax.experimental.pallas import tpu as pltpu


def _fpa_master_kernel(x_ref, w_ref, b_ref, gpb_ref, o_ref):
    # x_ref:   (Cin,  TH)   one HW tile of one batch element (NCHW layout)
    # w_ref:   (Cout, Cin)  BN-scale-folded 1x1 conv weight
    # b_ref:   (Cout, 1)    BN bias, broadcast over lanes (HW)
    # gpb_ref: (Cout, 1)    precomputed global-pool branch for this batch elem
    # o_ref:   (Cout, TH)   lane-dense output tile (HW on lanes)
    y = jnp.dot(w_ref[...], x_ref[...], preferred_element_type=jnp.float32)
    y = jnp.maximum(y + b_ref[...], 0.0)      # fused BN bias + ReLU
    y = y + gpb_ref[...]                      # broadcast-add pooled branch
    o_ref[...] = y.astype(o_ref.dtype)


def _pick_hw_tile(hw, max_tile=2048):
    """Largest HW tile <= max_tile that divides HW and keeps lanes full (x128)."""
    if hw <= max_tile or hw % 128 != 0:
        return hw
    best, t = 128, 128
    while t <= max_tile:
        if hw % t == 0:
            best = t
        t += 128
    return best


def simple_fpa(x_nchw, w_master, bn_m, w_gpb, bn_g, *, max_hw_tile=2048):
    """x_nchw: (B, Cin, H, W).  w_*: (Cout, Cin).  bn_*: dict of per-channel params."""
    B, Cin, H, W = x_nchw.shape
    Cout = w_master.shape[0]
    HW = H * W
    eps = 1e-5

    # Fold inference BN into the conv: y = (scale*W) @ x + bias.
    def fold(w, bn):
        scale = bn['gamma'] / jnp.sqrt(bn['var'] + eps)          # (Cout,)
        bias = bn['beta'] - bn['mean'] * scale                   # (Cout,)
        return (w * scale[:, None]).astype(jnp.float32), bias.astype(jnp.float32)

    w_m_f, b_m = fold(w_master, bn_m)                            # (Cout, Cin), (Cout,)
    w_g_f, b_g = fold(w_gpb, bn_g)

    # NCHW -> (B, Cin, HW): pure reshape, no transpose / no extra HBM pass.
    x = x_nchw.reshape(B, Cin, HW)

    # Global-pool branch hoisted out of the kernel (negligible flops); this is
    # what makes HW tiling legal without a cross-tile mean accumulator.
    pooled = jnp.mean(x.astype(jnp.float32), axis=2)                      # (B, Cin)
    x_gpb = jnp.maximum(pooled @ w_g_f.T + b_g[None, :], 0.0)             # (B, Cout)
    x_gpb = x_gpb[:, :, None]                                             # (B, Cout, 1)

    b_m_col = b_m[:, None]                                                # (Cout, 1)

    th = _pick_hw_tile(HW, max_hw_tile)
    n_t = HW // th

    # TODO(synk): at production channel counts (Cin/Cout >= 128) add a trailing
    # "arbitrary" K-tiling axis with an f32 VMEM accumulator; unnecessary here.
    out = pl.pallas_call(
        _fpa_master_kernel,
        out_shape=jax.ShapeDtypeStruct((B, Cout, HW), x_nchw.dtype),
        grid_spec=pltpu.PrefetchScalarGridSpec(
            num_scalar_prefetch=0,
            grid=(B, n_t),
            in_specs=[
                # x: one batch element, one HW tile (batch dim squeezed)
                pl.BlockSpec((pl.Squeezed(), Cin, th), lambda b, t: (b, 0, t)),
                # folded master weight: resident across the grid
                pl.BlockSpec((Cout, Cin), lambda b, t: (0, 0)),
                # master BN bias (Cout, 1): resident
                pl.BlockSpec((Cout, 1), lambda b, t: (0, 0)),
                # precomputed pooled branch, per batch element
                pl.BlockSpec((pl.Squeezed(), Cout, 1), lambda b, t: (b, 0, 0)),
            ],
            out_specs=pl.BlockSpec((pl.Squeezed(), Cout, th),
                                   lambda b, t: (b, 0, t)),
        ),
        compiler_params=pltpu.CompilerParams(
            dimension_semantics=("parallel", "parallel")),
    )(x, w_m_f, b_m_col, x_gpb)

    # (B, Cout, HW) -> NCHW: pure reshape again.
    return out.reshape(B, Cout, H, W)


def _reference(x_nchw, w_master, bn_m, w_gpb, bn_g):
    """Pure-JAX reference for validation."""
    eps = 1e-5

    def branch(x, w, bn):
        y = jnp.einsum('bchw,oc->bohw', x, w)
        scale = (bn['gamma'] / jnp.sqrt(bn['var'] + eps)).reshape(1, -1, 1, 1)
        bias = (bn['beta'] - bn['mean'] * bn['gamma'] / jnp.sqrt(bn['var'] + eps)
                ).reshape(1, -1, 1, 1)
        return jnp.maximum(y * scale + bias, 0.0)

    x_master = branch(x_nchw, w_master, bn_m)
    pooled = jnp.mean(x_nchw, axis=(2, 3), keepdims=True)
    x_gpb = branch(pooled, w_gpb, bn_g)
    return x_master + x_gpb


if __name__ == "__main__":
    key = jax.random.PRNGKey(0)
    B, Cin, H, W = 2, 4, 16, 16
    Cout = 8

    k = jax.random.split(key, 8)
    x = jax.random.normal(k[0], (B, Cin, H, W), dtype=jnp.float32)

    # deterministic parameter init (nn.Conv2d(Cin, Cout, 1) / BatchNorm2d(Cout))
    w_master = jax.random.normal(k[1], (Cout, Cin), dtype=jnp.float32) * 0.1
    w_gpb = jax.random.normal(k[2], (Cout, Cin), dtype=jnp.float32) * 0.1
    bn_m = dict(
        gamma=1.0 + 0.1 * jax.random.normal(k[3], (Cout,), dtype=jnp.float32),
        beta=0.1 * jax.random.normal(k[4], (Cout,), dtype=jnp.float32),
        mean=jnp.zeros((Cout,), jnp.float32),
        var=jnp.ones((Cout,), jnp.float32),
    )
    bn_g = dict(
        gamma=1.0 + 0.1 * jax.random.normal(k[5], (Cout,), dtype=jnp.float32),
        beta=0.1 * jax.random.normal(k[6], (Cout,), dtype=jnp.float32),
        mean=jnp.zeros((Cout,), jnp.float32),
        var=jnp.ones((Cout,), jnp.float32),
    )

    out = simple_fpa(x, w_master, bn_m, w_gpb, bn_g)
    out = jax.block_until_ready(out)

    ref = _reference(x, w_master, bn_m, w_gpb, bn_g)
    assert out.shape == (B, Cout, H, W)
    assert jnp.allclose(out, ref, atol=1e-4, rtol=1e-4)

    print("KERNEL_OK")
</pallas_src>

<mosaic_0001>
module attributes {stable_mosaic.version = 11 : i64} {
  func.func @_fpa_master_kernel(%arg0: i32, %arg1: i32, %arg2: memref<1x4x256xf32, #tpu.memory_space<vmem>>, %arg3: memref<8x4xf32, #tpu.memory_space<vmem>>, %arg4: memref<8x1xf32, #tpu.memory_space<vmem>>, %arg5: memref<1x8x1xf32, #tpu.memory_space<vmem>>, %arg6: memref<1x8x256xf32, #tpu.memory_space<vmem>>) attributes {dimension_semantics = [#tpu.dimension_semantics<parallel>, #tpu.dimension_semantics<parallel>], iteration_bounds = array<i64: 2, 1>, scalar_prefetch = 0 : i64, scratch_operands = 0 : i64, tpu.core_type = #tpu.core_type<tc>, window_params = [{transform_indices = @transform_0, window_bounds = array<i64: 1, 4, 256>}, {pipeline_mode = #tpu.pipeline_mode<synchronous>, transform_indices = @transform_1, window_bounds = array<i64: 8, 4>}, {pipeline_mode = #tpu.pipeline_mode<synchronous>, transform_indices = @transform_2, window_bounds = array<i64: 8, 1>}, {transform_indices = @transform_3, window_bounds = array<i64: 1, 8, 1>}, {transform_indices = @transform_4, window_bounds = array<i64: 1, 8, 256>}]} {
    %c0 = arith.constant 0 : index
    %c0_0 = arith.constant 0 : index
    %0 = vector.load %arg3[%c0, %c0_0] : memref<8x4xf32, #tpu.memory_space<vmem>>, vector<8x4xf32>
    %c0_1 = arith.constant 0 : index
    %c0_2 = arith.constant 0 : index
    %c0_3 = arith.constant 0 : index
    %1 = vector.load %arg2[%c0_1, %c0_2, %c0_3] : memref<1x4x256xf32, #tpu.memory_space<vmem>>, vector<1x4x256xf32>
    %2 = vector.shape_cast %1 : vector<1x4x256xf32> to vector<4x256xf32>
    %cst = arith.constant dense<0.000000e+00> : vector<8x256xf32>
    %3 = tpu.matmul %0, %2, %cst {dimension_numbers = #tpu.dot_dimension_numbers<[1], [0], [0], [1], [0, 0, 1, 1], [], []>} : vector<8x4xf32>, vector<4x256xf32>, vector<8x256xf32> -> vector<8x256xf32>
    %c0_4 = arith.constant 0 : index
    %c0_5 = arith.constant 0 : index
    %4 = vector.load %arg4[%c0_4, %c0_5] : memref<8x1xf32, #tpu.memory_space<vmem>>, vector<8x1xf32>
    %5 = vector.broadcast %4 : vector<8x1xf32> to vector<8x256xf32>
    %6 = arith.addf %3, %5 : vector<8x256xf32>
    %cst_6 = arith.constant 0.000000e+00 : f32
    %7 = vector.broadcast %cst_6 : f32 to vector<8x256xf32>
    %8 = arith.maximumf %6, %7 : vector<8x256xf32>
    %c0_7 = arith.constant 0 : index
    %c0_8 = arith.constant 0 : index
    %c0_9 = arith.constant 0 : index
    %9 = vector.load %arg5[%c0_7, %c0_8, %c0_9] : memref<1x8x1xf32, #tpu.memory_space<vmem>>, vector<1x8x1xf32>
    %10 = vector.shape_cast %9 : vector<1x8x1xf32> to vector<8x1xf32>
    %11 = vector.broadcast %10 : vector<8x1xf32> to vector<8x256xf32>
    %12 = arith.addf %8, %11 : vector<8x256xf32>
    %c0_10 = arith.constant 0 : index
    %c0_11 = arith.constant 0 : index
    %c0_12 = arith.constant 0 : index
    %13 = vector.load %arg6[%c0_10, %c0_11, %c0_12] : memref<1x8x256xf32, #tpu.memory_space<vmem>>, vector<1x8x256xf32>
    %14 = vector.shape_cast %13 : vector<1x8x256xf32> to vector<8x256xf32>
    %15 = vector.shape_cast %12 : vector<8x256xf32> to vector<1x8x256xf32>
    tpu.vector_store %arg6[%c0_10, %c0_11, %c0_12], %15 {strides = array<i32>} : memref<1x8x256xf32, #tpu.memory_space<vmem>>, vector<1x8x256xf32>,
    return
  }
  func.func @transform_0(%arg0: i32, %arg1: i32) -> (i32, i32, i32) {
    %c0_i32 = arith.constant 0 : i32
    %c0_i32_0 = arith.constant 0 : i32
    return %arg0, %c0_i32, %arg1 : i32, i32, i32
  }
  func.func @transform_1(%arg0: i32, %arg1: i32) -> (i32, i32) {
    %c0_i32 = arith.constant 0 : i32
    %c0_i32_0 = arith.constant 0 : i32
    %c0_i32_1 = arith.constant 0 : i32
    return %c0_i32, %c0_i32_0 : i32, i32
  }
  func.func @transform_2(%arg0: i32, %arg1: i32) -> (i32, i32) {
    %c0_i32 = arith.constant 0 : i32
    %c0_i32_0 = arith.constant 0 : i32
    %c0_i32_1 = arith.constant 0 : i32
    return %c0_i32, %c0_i32_0 : i32, i32
  }
  func.func @transform_3(%arg0: i32, %arg1: i32) -> (i32, i32, i32) {
    %c0_i32 = arith.constant 0 : i32
    %c0_i32_0 = arith.constant 0 : i32
    %c0_i32_1 = arith.constant 0 : i32
    return %arg0, %c0_i32, %c0_i32_0 : i32, i32, i32
  }
  func.func @transform_4(%arg0: i32, %arg1: i32) -> (i32, i32, i32) {
    %c0_i32 = arith.constant 0 : i32
    %c0_i32_0 = arith.constant 0 : i32
    return %arg0, %c0_i32, %arg1 : i32, i32, i32
  }
}

</mosaic_0001>

<bundles_post_ra>
// kernel: tpu_custom_call.1
= control target key start
LH: loop header
LB: loop body
LE: loop exit
PB: predicated region body
PF: predicated region fallthrough
CT: control target
= control target key end

     0   :  { %9 = vsyncpa [#allocation3], 0  ;;  %s743_s0 = inlined_call_operand.vmem [shape: f32[2,4,256], index: 0, kind: input, shape index: {}]   ;;  %s744_s1 = inlined_call_operand.vmem [shape: f32[8,4], index: 1, kind: input, shape index: {}]   ;;  %s745_s2 = inlined_call_operand.vmem [shape: f32[8,1], index: 2, kind: input, shape index: {}]   ;;  %s746_s3 = inlined_call_operand.vmem [shape: f32[2,8,1], index: 3, kind: input, shape index: {}]   ;;  %s747_s4 = inlined_call_operand.hbm [shape: f32[2,8,256], index: 4, kind: output, shape index: {}]  }
   0x1   :  { %11 = vsyncpa [#allocation3 + $0x1], 0  ;;  %s635_s15 = smov 0   ;;  %s637_s16 = smov 0  }
   0x2   :  { %s639_s17 = smov 0   ;;  %s641_s18 = smov 0  }
   0x3   :  { %s643_s19 = smov 0   ;;  %s645_s20 = smov 0  }
   0x4 LB: > { %s451_s21 = sadd.s32 4294967295, %s605_s20   ;;  %s452_s22 = sadd.s32 4294967294, %s605_s20   ;;  %s605_s20 = sphi %s645_s20, %s17_s20   ;;  %s601_s19 = sphi %s643_s19, %s754_s19   ;;  %s597_s18 = sphi %s641_s18, %s753_s18   ;;  %s593_s17 = sphi %s639_s17, %s752_s17   ;;  %s589_s16 = sphi %s637_s16, %s751_s16   ;;  %s585_s15 = sphi %s635_s15, %s750_s15  }
   0x5   : > { %s29_s23 = sadd.s32 1, %s601_s19  ;;  %s134_s24 = sadd.s32 1, %s593_s17 }
   0x6   : > { %p31_p0 = scmp.ge.s32.totalorder %s29_s23, 2  ;;  %p144_p1 = scmp.ne.s32.totalorder %s593_s17, %s589_s16 }
   0x7   : > { %p145_p2 = scmp.eq.s32.totalorder %s451_s21, 1  ;;  %p150_p3 = scmp.ne.s32.totalorder %s589_s16, %s585_s15 }
   0x8   : > { %s756_s23 = smov (%p31_p0, %s29_s23), 0  ;;  %p151_p5 = scmp.eq.s32.totalorder %s452_s22, 1 }
   0x9   : > { %p675_p4 = por %p145_p2, %p144_p1  ;;  %s129_s26 = ssub.s32 %s601_s19, %s756_s23 }
   0xa   : > { %p455_p6 = scmp.ge.s32.totalorder %s605_s20, 1  ;;  %p132_p7 = scmp.eq.s32.totalorder %s129_s26, 0 }
   0xb   : > { %p682_p8 = por %p151_p5, %p150_p3  ;;  %p195_p9 = scmp.lt.s32.totalorder %s605_s20, 3 }
   0xc   : > { %s688_s28 = scalar_select %p132_p7, %s593_s17, %s134_s24  }
   0xd   : > { %p196_p10 = pnand %p455_p6, %p195_p9 }
   0xe   : > { %p230_p11 = scmp.lt.s32.totalorder (!%p196_p10), %s597_s18, 1  ;;  %s226_s21 = sand.u32 (!%p196_p10), 1, %s589_s16  }
   0xf   : > { %199 = sbr.rel (%p196_p10) target bundleno = 243 (0xf3), region = 36  ;;  %s456_s22 = sshll.u32 (!%p196_p10), %s226_s21, 4 }
  0x10   : > { %s469_s24 = sshll.u32 (!%p196_p10), %s597_s18, 8  ;;  %s228_s26 = scalar_lea.vmem (!%p196_p10), [#allocation2], %s456_s22 }
  0x11   : > { %s363_s29 = sshll.u32 (!%p196_p10), %s228_s26, 4  ;;  %s347_s7 = scalar_lea.sflag (!%p196_p10), [#allocation3], %s226_s21  ;;  %s364_s29 = int_to_ptr.vmem [resolvable:$true] %s363_s29 }
  0x12   : > { %s529_s8 = scalar_lea.vmem (!%p196_p10), %s364_s29, 256 }
  0x13   : > { %p530_p12 = scmp.ne.s32.totalorder (!%p196_p10), %s364_s29, %s529_s8 }
  0x14   : > { %v607_v0 = vmov 0.0   ;;  %v608_v1 = vmov 0   ;;  %v246_v2 = vld [vmem:[%s745_s2] sm:$0xff]  ;;  %s231_s5 = scalar_select %p230_p11, %s597_s18, 1  ;;  %vm258_vm0 = vcmask 1043456   ;;  %vm254_vm1 = vcmask 31744  }
  0x15   : > { %327 = vmatprep.mubr.f32.mxu0 %v607_v0  ;;  %527 = vset.pattern.permute.xlu0 %v608_v1  ;;  %v244_v6 = vld [vmem:[%s744_s1] sm:$0xff]  ;;  %p531_p13 = pnand %p530_p12, %p675_p4 }
  0x16   : > { %249 = vperm.xlu0 %527, %v246_v2   ;;  %s468_s6 = sshll.u32 %s231_s5, 3 }
  0x17   : > { %s237_s9 = scalar_lea.vmem %s743_s0, %s468_s6  ;;  %s242_s12 = scalar_lea.vmem %s746_s3, %s468_s6 }
  0x18   : > { %v245_v3 = vld [vmem:[%s237_s9] sm:$0xff]  ;;  %s361_s6 = scalar_lea.hbm %s747_s4, %s469_s24  ;;  %p532_p0 = pneg %p531_p13 }
  0x19   : > { %v336_v4 = vld [vmem:[%s242_s12] sm:$0xff]  ;;  %v253_v5 = vcombine.high %v245_v3, %v245_v3  ;;  %s609_s9 = smov [#allocation2]  }
  0x1a   : > { %339 = vperm.xlu0 %527, %v336_v4   ;;  %s533_s18 = sshll.u32 %s609_s9, 4  ;;  %s534_s18 = int_to_ptr.vmem [resolvable:$false] %s533_s18 }
  0x1b   : > { %460 = vmatprep.subr.msk.mxu0 %vm258_vm0, %v253_v5  ;;  %s535_s10 = scalar_lea.vmem %s534_s18, 512  ;;  %p536_p1 = scmp.lt.s32.totalorder %s364_s29, %s534_s18 }
  0x1c   : > { %461 = vmatpush1.msk.msra.mxu0 %vm258_vm0, %v245_v3  ;;  %p537_p2 = scmp.lt.s32.totalorder %s535_s10, %s529_s8 }
  0x1d   : > { %462 = vmatmul.mubr.msk.f32.vlgmr.msra.gmra.mxu0 %vm254_vm1, %v244_v6 }
  0x1e   : > { %p538_p3 = por %p537_p2, %p536_p1 }
  0x20   : > { %p539_p5 = pnand %p538_p3, %p532_p0 }
  0x91   : > { %v250_v7 = vpop.permute.xlu0 %249 }
  0x95   : > { %v340_v13 = vpop.permute.xlu0 %339 }
  0xdd   : > { %v329_v8 = vpop.f32.mrf.mxu0 }
  0xde   : > { %v330_v9 = vadd.f32 %v329_v8, %v250_v7 }
  0xdf   : > { %v331_v10 = vpop.f32.mrf.mxu0 }
  0xe0   : > { %v334_v11 = vmax.f32 %v330_v9, 0.0  ;;  %v332_v12 = vadd.f32 %v331_v10, %v250_v7 }
  0xe2   : > { %v342_v14 = vadd.f32 %v340_v13, %v334_v11  ;;  %v335_v15 = vmax.f32 %v332_v12, 0.0 }
  0xe4   : > { %344 = vst [vmem:[%s228_s26] sm:$0xff] %v342_v14  ;;  %v343_v16 = vadd.f32 %v340_v13, %v335_v15 }
  0xe6   : > { %345 = vst [vmem:[%s228_s26 + $0x8] sm:$0xff] %v343_v16 }
  0xe7   : > { %542 = shalt.err (!%p539_p5)
}
  0xe8   : > { %s543_s11 = scalar_lea.hbm %s361_s6, 256  ;;  %s547_s14 = scalar_lea.hbm %s747_s4, 512 }
  0xe9   : > { %p544_p6 = scmp.ne.s32.totalorder %s361_s6, %s543_s11  ;;  %p548_p10 = scmp.lt.s32.totalorder %s361_s6, %s747_s4 }
  0xea   : > { %p549_p11 = scmp.lt.s32.totalorder %s547_s14, %s543_s11 }
  0xeb   : > { %p545_p7 = pnand %p544_p6, %p675_p4 }
  0xec   : > { %p550_p12 = por %p549_p11, %p548_p10 }
  0xed   : > { %p546_p9 = pneg %p545_p7 }
  0xef   : > { %p551_p13 = pnand %p550_p12, %p546_p9 }
  0xf1   : > { %554 = shalt.err (!%p551_p13)
}
  0xf2   : > { %470 = dma.vmem_to_hbm [thread:$0]  (%p675_p4), %s364_s29, 256, %s361_s6, %s347_s7  }
  0xf3 PF: > { %p476_p0 = scmp.ge.s32.totalorder %s605_s20, 2  ;;  %s375_s24 = sand.u32 1, %s585_s15  }
  0xf4   : > { %s376_s26 = scalar_lea.sflag [#allocation3], %s375_s24 }
  0xf5   : > { %p473_p1 = pnand %p476_p0, %p682_p8 }
  0xf7   : > { %p474_p2 = pneg %p473_p1 }
  0xf9   : > { %580 = dma.done.wait (%p474_p2), %s376_s26, 256  }
  0xfa   : > { %582 = vsyncadd (%p474_p2), %s376_s26, 4294967040  ;;  %s17_s20 = sadd.s32 1, %s605_s20   ;;  %s750_s15 = smov %s589_s16 }
  0xfb   : > { %p14_p3 = scmp.ge.s32.totalorder %s17_s20, 4   ;;  %s751_s16 = smov %s593_s17 }
  0xfc   : > { %s752_s17 = smov %s688_s28  ;;  %s753_s18 = smov %s601_s19 }
  0xfd   : > { %s754_s19 = smov %s756_s23  ;;  %16 = sbr.rel (!%p14_p3) target bundleno = 4 (0x4), region = 74 }
 0x102   :  { %381 = vsyncpa [#allocation3], 1 }
 0x103   :  { %383 = vsyncpa [#allocation3 + $0x1], 1 }

</bundles_post_ra>
